<compile_context>
chip_gen: v5e
topology: v5e:2x2
jax: 0.10.0
libtpu: 0.0.40
codegen_flags: <defaults>
</compile_context>

<pallas_src>
import jax
import jax.numpy as jnp
from jax import lax
from jax.experimental import pallas as pl
from jax.experimental.pallas import tpu as pltpu


def _self_interaction_kernel(w_ref, b_ref, x_ref, o_ref):
    """One grid step == one block of TA atoms (all angular orders fused).

    w_ref : (C, D)            weight, VMEM-resident across the grid
    b_ref : (D, TA*m_total)   bias slab (bias[d] on l==0 columns, 0 elsewhere)
    x_ref : (C, TA*m_total)   fused input slab for this atom block
    o_ref : (D, TA*m_total)   fused output slab for this atom block

    o[d, n] = sum_c W[c, d] * x[c, n] + b[d, n]
    """
    acc = lax.dot_general(
        w_ref[...], x_ref[...],
        dimension_numbers=(((0,), (0,)), ((), ())),
        preferred_element_type=jnp.float32,
    )
    acc = acc + b_ref[...]               # f32 epilogue (columns with b == 0 unaffected)
    o_ref[...] = acc.astype(o_ref.dtype)


def self_interaction_forward(V, weight, bias, *, block_atoms=256):
    """JAX/Pallas equivalent of SelfInteractionLayer.forward.

    V: dict {l: (a, input_dim, 2l+1)}  ->  dict {l: (a, output_dim, 2l+1)}
    One fused pallas_call; grid over blocks of atoms, all angular orders merged
    along the lane axis.
    """
    keys = list(V.keys())
    vals = [V[k] for k in keys]
    a = int(vals[0].shape[0])
    c, d = (int(s) for s in weight.shape)
    widths = [int(v.shape[2]) for v in vals]
    m_total = int(sum(widths))
    out_dtype = vals[0].dtype

    # --- atom-block size -----------------------------------------------------
    if a <= block_atoms:
        ta = a                                      # single block: full-extent lanes (always legal)
    else:
        ta = ((int(block_atoms) + 127) // 128) * 128  # multi-block: TA*m_total stays a multiple of 128
    n_blocks = int(pl.cdiv(a, ta))
    a_pad = n_blocks * ta
    l_blk = ta * m_total

    # --- restage inputs: one lane-dense (C, a_pad*m_total) slab ---------------
    x = jnp.concatenate([jnp.transpose(v, (1, 0, 2)) for v in vals], axis=-1)  # (C, a, m_total)
    if a_pad != a:
        x = jnp.pad(x, ((0, 0), (0, a_pad - a), (0, 0)))
    x = x.reshape(c, a_pad * m_total)

    # --- bias slab: bias[d] on the l==0 columns, 0 elsewhere ------------------
    bias_cols = jnp.zeros((d, m_total), dtype=jnp.float32)
    if 0 in keys:
        i0 = keys.index(0)
        off0 = int(sum(widths[:i0]))
        m0 = widths[i0]
        bias_cols = bias_cols.at[:, off0:off0 + m0].set(
            jnp.broadcast_to(bias.astype(jnp.float32)[:, None], (d, m0)))
    bias_slab = jnp.tile(bias_cols, (1, ta))        # (D, TA*m_total), VMEM-resident

    itemsize = jnp.dtype(out_dtype).itemsize
    cost = pl.CostEstimate(
        flops=2 * a_pad * m_total * c * d,
        transcendentals=0,
        bytes_accessed=(c * a_pad * m_total * int(x.dtype.itemsize)
                        + c * d * int(weight.dtype.itemsize)
                        + d * l_blk * 4
                        + d * a_pad * m_total * int(itemsize)),
    )

    # NOTE: at realistic C/D this kernel is pure HBM streaming (C=4 uses <1% of
    # the MXU); on v6e/v7x cast `x` and `weight` to bfloat16 here (keep
    # preferred_element_type=f32 and the f32 bias epilogue) to halve HBM
    # traffic.  Kept f32 end-to-end so the exact-match test below holds.
    out = pl.pallas_call(
        _self_interaction_kernel,
        grid=(n_blocks,),
        in_specs=[
            pl.BlockSpec((c, d), lambda i: (0, 0)),       # weight: DMA'd once, resident
            pl.BlockSpec((d, l_blk), lambda i: (0, 0)),   # bias slab: DMA'd once, resident
            pl.BlockSpec((c, l_blk), lambda i: (0, i)),   # streamed atom blocks
        ],
        out_specs=pl.BlockSpec((d, l_blk), lambda i: (0, i)),
        out_shape=jax.ShapeDtypeStruct((d, a_pad * m_total), out_dtype),
        compiler_params=pltpu.CompilerParams(
            dimension_semantics=("parallel",),            # megacore sharding on v7x
        ),
        cost_estimate=cost,
    )(weight, bias_slab, x)

    # --- de-stage back to the PyTorch per-key (a, D, 2l+1) layout -------------
    out = out.reshape(d, a_pad, m_total)[:, :a, :]        # (D, a, m_total)
    result = {}
    off = 0
    for k, m in zip(keys, widths):
        result[k] = jnp.transpose(out[:, :, off:off + m], (1, 0, 2))  # (a, D, m)
        off += m
    return result


def xavier_uniform(key, shape, dtype=jnp.float32):
    fan_in, fan_out = shape
    limit = (6.0 / (fan_in + fan_out)) ** 0.5
    return jax.random.uniform(key, shape, dtype, minval=-limit, maxval=limit)


def _reference(V, weight, bias):
    out = {}
    for key, v in V.items():
        if key == 0:
            out[key] = jnp.swapaxes(jnp.einsum("acm,cd->amd", v, weight) + bias, -1, -2)
        else:
            out[key] = jnp.einsum("acm,cd->adm", v, weight)
    return out


if __name__ == "__main__":
    input_dim, output_dim, n_atoms = 4, 8, 2

    root = jax.random.PRNGKey(0)
    k_w, k_b, k0, k1, k2 = jax.random.split(root, 5)

    # Parameter shapes match the nn.Parameter shapes.  The module inits bias to
    # zeros; use a deterministic nonzero value so the l==0 bias path is exercised.
    weight = xavier_uniform(k_w, (input_dim, output_dim))             # (C, D)
    bias = 0.1 * jax.random.normal(k_b, (output_dim,), jnp.float32)   # (D,)

    # Input dict keyed by angular order l, values of shape (a, C, 2l+1).
    V = {
        0: jax.random.normal(k0, (n_atoms, input_dim, 1), dtype=jnp.float32),
        1: jax.random.normal(k1, (n_atoms, input_dim, 3), dtype=jnp.float32),
        2: jax.random.normal(k2, (n_atoms, input_dim, 5), dtype=jnp.float32),
    }

    out = self_interaction_forward(V, weight, bias)
    for key in out:
        jax.block_until_ready(out[key])

    ref = _reference(V, weight, bias)
    for key, v in V.items():
        assert out[key].shape == (n_atoms, output_dim, v.shape[-1])
        assert jnp.allclose(out[key], ref[key], atol=1e-5, rtol=1e-5)

    # Also exercise the multi-block + atom-padding path (grid of 2 steps, TA=128).
    n_big = 130
    kb0, kb1, kb2 = jax.random.split(jax.random.PRNGKey(1), 3)
    V_big = {
        0: jax.random.normal(kb0, (n_big, input_dim, 1), dtype=jnp.float32),
        1: jax.random.normal(kb1, (n_big, input_dim, 3), dtype=jnp.float32),
        2: jax.random.normal(kb2, (n_big, input_dim, 5), dtype=jnp.float32),
    }
    out_big = self_interaction_forward(V_big, weight, bias, block_atoms=128)
    for key in out_big:
        jax.block_until_ready(out_big[key])
    ref_big = _reference(V_big, weight, bias)
    for key in V_big:
        assert out_big[key].shape == (n_big, output_dim, V_big[key].shape[-1])
        assert jnp.allclose(out_big[key], ref_big[key], atol=1e-5, rtol=1e-5)

    print("KERNEL_OK")
</pallas_src>

<mosaic_0001>
module attributes {stable_mosaic.version = 11 : i64} {
  func.func @_self_interaction_kernel(%arg0: i32, %arg1: memref<4x8xf32, #tpu.memory_space<vmem>>, %arg2: memref<8x18xf32, #tpu.memory_space<vmem>>, %arg3: memref<4x18xf32, #tpu.memory_space<vmem>>, %arg4: memref<8x18xf32, #tpu.memory_space<vmem>>) attributes {dimension_semantics = [#tpu.dimension_semantics<parallel>], iteration_bounds = array<i64: 1>, scalar_prefetch = 0 : i64, scratch_operands = 0 : i64, tpu.core_type = #tpu.core_type<tc>, window_params = [{pipeline_mode = #tpu.pipeline_mode<synchronous>, transform_indices = @transform_0, window_bounds = array<i64: 4, 8>}, {pipeline_mode = #tpu.pipeline_mode<synchronous>, transform_indices = @transform_1, window_bounds = array<i64: 8, 18>}, {transform_indices = @transform_2, window_bounds = array<i64: 4, 18>}, {transform_indices = @transform_3, window_bounds = array<i64: 8, 18>}]} {
    %c0 = arith.constant 0 : index
    %c0_0 = arith.constant 0 : index
    %0 = vector.load %arg1[%c0, %c0_0] : memref<4x8xf32, #tpu.memory_space<vmem>>, vector<4x8xf32>
    %c0_1 = arith.constant 0 : index
    %c0_2 = arith.constant 0 : index
    %1 = vector.load %arg3[%c0_1, %c0_2] : memref<4x18xf32, #tpu.memory_space<vmem>>, vector<4x18xf32>
    %cst = arith.constant dense<0.000000e+00> : vector<8x18xf32>
    %2 = tpu.matmul %0, %1, %cst {dimension_numbers = #tpu.dot_dimension_numbers<[0], [0], [1], [1], [0, 1, 1, 1], [], []>} : vector<4x8xf32>, vector<4x18xf32>, vector<8x18xf32> -> vector<8x18xf32>
    %c0_3 = arith.constant 0 : index
    %c0_4 = arith.constant 0 : index
    %3 = vector.load %arg2[%c0_3, %c0_4] : memref<8x18xf32, #tpu.memory_space<vmem>>, vector<8x18xf32>
    %4 = arith.addf %2, %3 : vector<8x18xf32>
    %c0_5 = arith.constant 0 : index
    %c0_6 = arith.constant 0 : index
    %5 = vector.load %arg4[%c0_5, %c0_6] : memref<8x18xf32, #tpu.memory_space<vmem>>, vector<8x18xf32>
    tpu.vector_store %arg4[%c0_5, %c0_6], %4 {strides = array<i32>} : memref<8x18xf32, #tpu.memory_space<vmem>>, vector<8x18xf32>,
    return
  }
  func.func @transform_0(%arg0: i32) -> (i32, i32) {
    %c0_i32 = arith.constant 0 : i32
    %c0_i32_0 = arith.constant 0 : i32
    %c0_i32_1 = arith.constant 0 : i32
    return %c0_i32, %c0_i32_0 : i32, i32
  }
  func.func @transform_1(%arg0: i32) -> (i32, i32) {
    %c0_i32 = arith.constant 0 : i32
    %c0_i32_0 = arith.constant 0 : i32
    %c0_i32_1 = arith.constant 0 : i32
    return %c0_i32, %c0_i32_0 : i32, i32
  }
  func.func @transform_2(%arg0: i32) -> (i32, i32) {
    %c0_i32 = arith.constant 0 : i32
    %c0_i32_0 = arith.constant 0 : i32
    return %c0_i32, %arg0 : i32, i32
  }
  func.func @transform_3(%arg0: i32) -> (i32, i32) {
    %c0_i32 = arith.constant 0 : i32
    %c0_i32_0 = arith.constant 0 : i32
    return %c0_i32, %arg0 : i32, i32
  }
}

</mosaic_0001>

<bundles_post_ra>
// kernel: tpu_custom_call.1
= control target key start
LH: loop header
LB: loop body
LE: loop exit
PB: predicated region body
PF: predicated region fallthrough
CT: control target
= control target key end

     0   :  { %8 = vsyncpa [#allocation3], 0  ;;  %s284_s0 = inlined_call_operand.hbm [shape: f32[4,8], index: 0, kind: input, shape index: {}]   ;;  %s285_s1 = inlined_call_operand.hbm [shape: f32[8,18], index: 1, kind: input, shape index: {}]   ;;  %s286_s2 = inlined_call_operand.hbm [shape: f32[4,18], index: 2, kind: input, shape index: {}]   ;;  %s287_s3 = inlined_call_operand.hbm [shape: f32[8,18], index: 3, kind: output, shape index: {}]  }
   0x1   :  { %9 = vsyncpa [#allocation6], 0  ;;  %s27_s14 = sshll.u32 %s285_s1, 4  ;;  %s28_s14 = int_to_ptr.hbm [resolvable:$true] %s27_s14 }
   0x2   :  { %10 = vsyncpa [#allocation4], 0  ;;  %s248_s15 = smov [#allocation5]   ;;  %s16_s19 = sshll.u32 %s284_s0, 4  ;;  %s17_s19 = int_to_ptr.hbm [resolvable:$true] %s16_s19 }
   0x3   :  { %s29_s16 = sshll.u32 %s248_s15, 4  ;;  %s249_s20 = smov [#allocation2]   ;;  %s30_s16 = int_to_ptr.vmem [resolvable:$true] %s29_s16 }
   0x4   :  { %32 = dma.hbm_to_vmem [thread:$0]  %s28_s14, 128, %s30_s16, [#allocation6]  }
   0x5   :  { %s18_s21 = sshll.u32 %s249_s20, 4  ;;  %s38_s24 = sshll.u32 %s286_s2, 4  ;;  %s19_s21 = int_to_ptr.vmem [resolvable:$true] %s18_s21  ;;  %s39_s24 = int_to_ptr.hbm [resolvable:$true] %s38_s24 }
   0x6   :  { %21 = dma.hbm_to_vmem [thread:$0]  %s17_s19, 64, %s19_s21, [#allocation3]  }
   0x7   :  { %s250_s1 = smov [#allocation7]  }
   0x8   :  { %s40_s25 = sshll.u32 %s250_s1, 4  ;;  %s41_s25 = int_to_ptr.vmem [resolvable:$true] %s40_s25 }
   0x9   :  { %43 = dma.hbm_to_vmem [thread:$0]  %s39_s24, 64, %s41_s25, [#allocation6]  }
   0xa   :  { %242 = dma.done.wait [#allocation3], 64  }
   0xb   :  { %243 = vsyncadd [#allocation3], 4294967232 }
   0xc   :  { %244 = dma.done.wait [#allocation6], 192  }
   0xd   :  { %245 = vsyncadd [#allocation6], 4294967104  ;;  %vm95_vm0 = vcmask 1043456   ;;  %v56_v0 = vld [vmem:[#allocation2] sm:$0xf]  ;;  %vm91_vm1 = vcmask 31744  }
   0xe   :  { %v57_v1 = vld [vmem:[#allocation7] sm:$0xf]  ;;  %59 = vxpose.xlu0.b32.start.end [1/1] (short) (narrow) %v56_v0, 8  ;;  %v58_v3 = vld [vmem:[#allocation5] sm:$0xff]  ;;  %s251_s0 = smov [#allocation8]   ;;  %s128_s28 = sshll.u32 %s287_s3, 4  ;;  %s129_s28 = int_to_ptr.hbm [resolvable:$true] %s128_s28 }
   0xf   :  { %139 = vmatpush.msk.msra.mxu0 %vm95_vm0, %v57_v1  ;;  %s126_s2 = sshll.u32 %s251_s0, 4  ;;  %vm119_vm2 = vcmask 146432   ;;  %s127_s2 = int_to_ptr.vmem [resolvable:$true] %s126_s2 }
  0xb2   :  { %v75_v2 = vpop.trf.xlu0 }
  0xb3   :  { %140 = vmatmul.msk.f32.vlgmr.msra.gmra.mxu0 %vm91_vm1, %v75_v2 }
 0x130   :  { %v116_v4 = vpop.f32.mrf.mxu0 }
 0x131   :  { %v117_v5 = vadd.f32 %v116_v4, %v58_v3 }
 0x133   :  { %120 = vst.msk [vmem:[#allocation8] sm:$0xff] %vm119_vm2, %v117_v5 }
 0x134   :  { %131 = dma.vmem_to_hbm [thread:$0]  %s127_s2, 128, %s129_s28, [#allocation4]  }
 0x135   :  { %246 = dma.done.wait [#allocation4], 128  }
 0x136   :  { %247 = vsyncadd [#allocation4], 4294967168 }
 0x137   :  { %136 = vsyncpa [#allocation3], 1 }
 0x138   :  { %137 = vsyncpa [#allocation6], 1 }
 0x139   :  { %138 = vsyncpa [#allocation4], 1 }

</bundles_post_ra>
